<compile_context>
chip_gen: v6e
topology: v6e:2x2x1
jax: 0.10.0
libtpu: 0.0.40
codegen_flags: <defaults>
</compile_context>

<pallas_src>
import functools

import jax
import jax.numpy as jnp
from jax import lax
from jax.experimental import pallas as pl
from jax.experimental.pallas import tpu as pltpu


def _lstm_kernel(x_ref, wg_ref, wo_ref, out_ref, *,
                 input_dim, hidden_dim, seq_len, batch_tile):
    """LSTM recurrence + Linear + LogSoftmax for one tile of Bt sequences.

    x_ref   : (1, S*Bt, In)   VMEM   row index = t*Bt + b (time-major tile)
    wg_ref  : (In+H+1, 4H)    VMEM   [ W_ih^T ; W_hh^T ; b_ih+b_hh ],
                                     gate order permuted to [i, f, o, g]
    wo_ref  : (H+1, V)        VMEM   [ W_ho^T ; b_ho ]
    out_ref : (1, S*Bt, V)    VMEM   log-softmax outputs, row = t*Bt + b
    """
    In, H, S, Bt = input_dim, hidden_dim, seq_len, batch_tile

    # Static sub-views of the packed weight slabs (zero-cost slicing).
    wih_t = wg_ref[0:In, :]                    # (In, 4H)
    whh_t = wg_ref[In:In + H, :]               # (H, 4H)  loop-invariant MXU RHS
    b = wg_ref[In + H:In + H + 1, :]           # (1, 4H)
    who_t = wo_ref[0:H, :]                     # (H, V)
    bo = wo_ref[H:H + 1, :]                    # (1, V)

    # Input projection for ALL timesteps and all Bt sequences in one matmul
    # (off the serial critical path).
    x2 = x_ref[0]                              # (S*Bt, In)
    xw = (jnp.dot(x2, wih_t, preferred_element_type=jnp.float32)
          + b)                                 # (S*Bt, 4H)

    # init_hidden(): zeros.  h / c live in vregs (loop-carried, no VMEM trips).
    h = jnp.zeros((Bt, H), jnp.float32)
    c = jnp.zeros((Bt, H), jnp.float32)

    # Fully unrolled static recurrence (S is small and static).
    hs = []
    for t in range(S):
        gates = xw[t * Bt:(t + 1) * Bt, :] + jnp.dot(
            h, whh_t, preferred_element_type=jnp.float32)      # (Bt, 4H)

        # Gate order [i, f, o, g]: one tanh-based logistic over the 3H slab,
        # one tanh over the g slab -> exactly 2 EUP pushes here + tanh(c)
        # below = 3 EUP ops per step on the recurrence chain.
        sig = 0.5 * (jnp.tanh(0.5 * gates[:, :3 * H]) + 1.0)   # (Bt, 3H)
        g_g = jnp.tanh(gates[:, 3 * H:])                       # (Bt, H)
        i_g = sig[:, 0 * H:1 * H]
        f_g = sig[:, 1 * H:2 * H]
        o_g = sig[:, 2 * H:3 * H]
        # NOTE: the 32-lane gate slices land at lane offsets 0/32/64; any
        # relayout copies go to the otherwise-idle XLU slot.

        c = f_g * c + i_g * g_g
        h = o_g * jnp.tanh(c)
        hs.append(h)

    # Hidden states kept in registers; one concatenate feeds the hoisted
    # h2o matmul directly (no VMEM scratch, no masked partial stores).
    hs_all = jnp.concatenate(hs, axis=0)                        # (S*Bt, H)

    logits = (jnp.dot(hs_all, who_t, preferred_element_type=jnp.float32)
              + bo)                                             # (S*Bt, V)
    m = jnp.max(logits, axis=1, keepdims=True)
    shifted = logits - m
    lse = jnp.log(jnp.sum(jnp.exp(shifted), axis=1, keepdims=True))
    out_ref[0] = shifted - lse                                  # lane-dense store


def rnn_lstm_forward(x, w_ih, w_hh, b_ih, b_hh, w_ho, b_ho, *, batch_tile=8):
    """Forward pass of RNN_LSTM.

    x: (S, In) for a single sequence (matches the PyTorch module) or
       (B, S, In) for a batch of independent sequences (each with h0=c0=0).
    Returns (S, V) or (B, S, V) log-probabilities.
    """
    x = jnp.asarray(x, jnp.float32)
    single = (x.ndim == 2)
    if single:
        x = x[None]                                            # (1, S, In)
    B, S, In = x.shape
    four_h, H = w_hh.shape
    assert four_h == 4 * H
    V = w_ho.shape[0]

    # Permute gate rows: PyTorch [i, f, g, o] -> [i, f, o, g] so the kernel
    # applies one logistic over lanes 0:3H and one tanh over lanes 3H:4H.
    perm = jnp.concatenate([
        jnp.arange(0 * H, 1 * H),   # i
        jnp.arange(1 * H, 2 * H),   # f
        jnp.arange(3 * H, 4 * H),   # o
        jnp.arange(2 * H, 3 * H),   # g
    ])
    w_ih_p = jnp.asarray(w_ih, jnp.float32)[perm]               # (4H, In)
    w_hh_p = jnp.asarray(w_hh, jnp.float32)[perm]               # (4H, H)
    b = (jnp.asarray(b_ih, jnp.float32)
         + jnp.asarray(b_hh, jnp.float32))[perm]                # (4H,)

    # Pack weights into two HBM slabs (pre-transposed in the wrapper).
    wg = jnp.concatenate([w_ih_p.T, w_hh_p.T, b.reshape(1, 4 * H)],
                         axis=0)                                # (In+H+1, 4H)
    wo = jnp.concatenate([jnp.asarray(w_ho, jnp.float32).T,
                          jnp.asarray(b_ho, jnp.float32).reshape(1, V)],
                         axis=0)                                # (H+1, V)

    # Pad the batch to a multiple of the batch tile and pack each tile
    # time-major: x_packed[nb, t*Bt + b, :] = x[nb*Bt + b, t, :].
    Bt = batch_tile
    B_pad = ((B + Bt - 1) // Bt) * Bt
    if B_pad != B:
        x = jnp.concatenate(
            [x, jnp.zeros((B_pad - B, S, In), jnp.float32)], axis=0)
    nb = B_pad // Bt
    x_packed = (x.reshape(nb, Bt, S, In)
                  .transpose(0, 2, 1, 3)                        # (nb, S, Bt, In)
                  .reshape(nb, S * Bt, In))

    kernel = functools.partial(_lstm_kernel, input_dim=In, hidden_dim=H,
                               seq_len=S, batch_tile=Bt)

    out_packed = pl.pallas_call(
        kernel,
        out_shape=jax.ShapeDtypeStruct((nb, S * Bt, V), jnp.float32),
        grid=(nb,),
        in_specs=[
            # Per-tile input block.
            pl.BlockSpec((1, S * Bt, In), lambda i: (i, 0, 0)),
            # Weights: constant block index -> VMEM-resident across the grid.
            pl.BlockSpec((In + H + 1, 4 * H), lambda i: (0, 0)),
            pl.BlockSpec((H + 1, V), lambda i: (0, 0)),
        ],
        out_specs=pl.BlockSpec((1, S * Bt, V), lambda i: (i, 0, 0)),
        compiler_params=pltpu.CompilerParams(
            dimension_semantics=("parallel",)),   # shard tiles over TCs (v7x)
    )(x_packed, wg, wo)

    out = (out_packed.reshape(nb, S, Bt, V)
                     .transpose(0, 2, 1, 3)                     # (nb, Bt, S, V)
                     .reshape(B_pad, S, V))[:B]
    if single:
        out = out[0]                                            # (S, V)
    return out


def rnn_lstm_reference(x, w_ih, w_hh, b_ih, b_hh, w_ho, b_ho):
    """Pure-JAX reference of the same forward pass (PyTorch gate order)."""
    H = w_hh.shape[1]
    b = b_ih + b_hh

    def step(carry, x_t):
        h, c = carry
        gates = x_t @ w_ih.T + h @ w_hh.T + b
        i = jax.nn.sigmoid(gates[0 * H:1 * H])
        f = jax.nn.sigmoid(gates[1 * H:2 * H])
        g = jnp.tanh(gates[2 * H:3 * H])
        o = jax.nn.sigmoid(gates[3 * H:4 * H])
        c = f * c + i * g
        h = o * jnp.tanh(c)
        return (h, c), h

    h0 = jnp.zeros((H,), jnp.float32)
    c0 = jnp.zeros((H,), jnp.float32)
    _, hs = lax.scan(step, (h0, c0), x)
    logits = hs @ w_ho.T + b_ho
    return jax.nn.log_softmax(logits, axis=1)


if __name__ == "__main__":
    # Small shapes consistent with the module's forward pass.
    seq_len, input_dim, hidden_dim, vocab_size = 8, 16, 32, 128
    batch = 16   # independent sequences batched into the matmul M dimension

    key = jax.random.PRNGKey(0)
    ks = jax.random.split(key, 7)
    k_bound = 1.0 / jnp.sqrt(hidden_dim)

    # Deterministic synthetic parameters (PyTorch-style uniform init).
    x = jax.random.normal(ks[0], (batch, seq_len, input_dim), jnp.float32)
    w_ih = jax.random.uniform(ks[1], (4 * hidden_dim, input_dim),
                              jnp.float32, -k_bound, k_bound)
    w_hh = jax.random.uniform(ks[2], (4 * hidden_dim, hidden_dim),
                              jnp.float32, -k_bound, k_bound)
    b_ih = jax.random.uniform(ks[3], (4 * hidden_dim,),
                              jnp.float32, -k_bound, k_bound)
    b_hh = jax.random.uniform(ks[4], (4 * hidden_dim,),
                              jnp.float32, -k_bound, k_bound)
    w_ho = jax.random.uniform(ks[5], (vocab_size, hidden_dim),
                              jnp.float32, -k_bound, k_bound)
    b_ho = jax.random.uniform(ks[6], (vocab_size,),
                              jnp.float32, -k_bound, k_bound)

    # Batched run (grid of 2 batch tiles of 8 sequences).
    out = rnn_lstm_forward(x, w_ih, w_hh, b_ih, b_hh, w_ho, b_ho)
    out = jax.block_until_ready(out)
    assert out.shape == (batch, seq_len, vocab_size)

    ref = jax.vmap(
        lambda xs: rnn_lstm_reference(xs, w_ih, w_hh, b_ih, b_hh, w_ho, b_ho)
    )(x)
    err = float(jnp.max(jnp.abs(out - ref)))
    assert err < 5e-4, err

    # Single-sequence path: exactly the PyTorch module's forward.
    out1 = rnn_lstm_forward(x[0], w_ih, w_hh, b_ih, b_hh, w_ho, b_ho)
    out1 = jax.block_until_ready(out1)
    assert out1.shape == (seq_len, vocab_size)
    err1 = float(jnp.max(jnp.abs(out1 - ref[0])))
    assert err1 < 5e-4, err1

    print("KERNEL_OK")
</pallas_src>

<mosaic_0001>
module attributes {stable_mosaic.version = 11 : i64} {
  func.func @_lstm_kernel(%arg0: i32, %arg1: memref<1x64x16xf32, #tpu.memory_space<vmem>>, %arg2: memref<49x128xf32, #tpu.memory_space<vmem>>, %arg3: memref<33x128xf32, #tpu.memory_space<vmem>>, %arg4: memref<1x64x128xf32, #tpu.memory_space<vmem>>) attributes {dimension_semantics = [#tpu.dimension_semantics<parallel>], iteration_bounds = array<i64: 2>, scalar_prefetch = 0 : i64, scratch_operands = 0 : i64, tpu.core_type = #tpu.core_type<tc>, window_params = [{transform_indices = @transform_0, window_bounds = array<i64: 1, 64, 16>}, {pipeline_mode = #tpu.pipeline_mode<synchronous>, transform_indices = @transform_1, window_bounds = array<i64: 49, 128>}, {pipeline_mode = #tpu.pipeline_mode<synchronous>, transform_indices = @transform_2, window_bounds = array<i64: 33, 128>}, {transform_indices = @transform_3, window_bounds = array<i64: 1, 64, 128>}]} {
    %c0 = arith.constant 0 : index
    %c0_0 = arith.constant 0 : index
    %0 = vector.load %arg2[%c0, %c0_0] : memref<49x128xf32, #tpu.memory_space<vmem>>, vector<16x128xf32>
    %c16 = arith.constant 16 : index
    %c0_1 = arith.constant 0 : index
    %1 = vector.load %arg2[%c16, %c0_1] : memref<49x128xf32, #tpu.memory_space<vmem>>, vector<32x128xf32>
    %c48 = arith.constant 48 : index
    %c0_2 = arith.constant 0 : index
    %2 = vector.load %arg2[%c48, %c0_2] : memref<49x128xf32, #tpu.memory_space<vmem>>, vector<1x128xf32>
    %c0_3 = arith.constant 0 : index
    %c0_4 = arith.constant 0 : index
    %3 = vector.load %arg3[%c0_3, %c0_4] : memref<33x128xf32, #tpu.memory_space<vmem>>, vector<32x128xf32>
    %c32 = arith.constant 32 : index
    %c0_5 = arith.constant 0 : index
    %4 = vector.load %arg3[%c32, %c0_5] : memref<33x128xf32, #tpu.memory_space<vmem>>, vector<1x128xf32>
    %c0_6 = arith.constant 0 : index
    %c0_7 = arith.constant 0 : index
    %c0_8 = arith.constant 0 : index
    %5 = vector.load %arg1[%c0_6, %c0_7, %c0_8] : memref<1x64x16xf32, #tpu.memory_space<vmem>>, vector<1x64x16xf32>
    %6 = vector.shape_cast %5 : vector<1x64x16xf32> to vector<64x16xf32>
    %cst = arith.constant dense<0.000000e+00> : vector<64x128xf32>
    %7 = tpu.matmul %6, %0, %cst {dimension_numbers = #tpu.dot_dimension_numbers<[1], [0], [0], [1], [0, 0, 1, 1], [], []>} : vector<64x16xf32>, vector<16x128xf32>, vector<64x128xf32> -> vector<64x128xf32>
    %8 = vector.broadcast %2 : vector<1x128xf32> to vector<64x128xf32>
    %9 = arith.addf %7, %8 : vector<64x128xf32>
    %cst_9 = arith.constant 0.000000e+00 : f32
    %10 = vector.broadcast %cst_9 : f32 to vector<8x32xf32>
    %cst_10 = arith.constant 0.000000e+00 : f32
    %11 = vector.broadcast %cst_10 : f32 to vector<8x32xf32>
    %12 = vector.extract_strided_slice %9 {offsets = [0, 0], sizes = [8, 128], strides = [1, 1]} : vector<64x128xf32> to vector<8x128xf32>
    %cst_11 = arith.constant dense<0.000000e+00> : vector<8x128xf32>
    %13 = tpu.matmul %10, %1, %cst_11 {dimension_numbers = #tpu.dot_dimension_numbers<[1], [0], [0], [1], [0, 0, 1, 1], [], []>} : vector<8x32xf32>, vector<32x128xf32>, vector<8x128xf32> -> vector<8x128xf32>
    %14 = arith.addf %12, %13 : vector<8x128xf32>
    %15 = vector.extract_strided_slice %14 {offsets = [0, 0], sizes = [8, 96], strides = [1, 1]} : vector<8x128xf32> to vector<8x96xf32>
    %cst_12 = arith.constant 5.000000e-01 : f32
    %16 = vector.broadcast %cst_12 : f32 to vector<8x96xf32>
    %17 = arith.mulf %16, %15 : vector<8x96xf32>
    %18 = math.tanh %17 : vector<8x96xf32>
    %cst_13 = arith.constant 1.000000e+00 : f32
    %19 = vector.broadcast %cst_13 : f32 to vector<8x96xf32>
    %20 = arith.addf %18, %19 : vector<8x96xf32>
    %cst_14 = arith.constant 5.000000e-01 : f32
    %21 = vector.broadcast %cst_14 : f32 to vector<8x96xf32>
    %22 = arith.mulf %21, %20 : vector<8x96xf32>
    %23 = vector.extract_strided_slice %14 {offsets = [0, 96], sizes = [8, 32], strides = [1, 1]} : vector<8x128xf32> to vector<8x32xf32>
    %24 = math.tanh %23 : vector<8x32xf32>
    %25 = vector.extract_strided_slice %22 {offsets = [0, 0], sizes = [8, 32], strides = [1, 1]} : vector<8x96xf32> to vector<8x32xf32>
    %26 = vector.extract_strided_slice %22 {offsets = [0, 32], sizes = [8, 32], strides = [1, 1]} : vector<8x96xf32> to vector<8x32xf32>
    %27 = vector.extract_strided_slice %22 {offsets = [0, 64], sizes = [8, 32], strides = [1, 1]} : vector<8x96xf32> to vector<8x32xf32>
    %28 = arith.mulf %26, %11 : vector<8x32xf32>
    %29 = arith.mulf %25, %24 : vector<8x32xf32>
    %30 = arith.addf %28, %29 : vector<8x32xf32>
    %31 = math.tanh %30 : vector<8x32xf32>
    %32 = arith.mulf %27, %31 : vector<8x32xf32>
    %33 = vector.extract_strided_slice %9 {offsets = [8, 0], sizes = [8, 128], strides = [1, 1]} : vector<64x128xf32> to vector<8x128xf32>
    %cst_15 = arith.constant dense<0.000000e+00> : vector<8x128xf32>
    %34 = tpu.matmul %32, %1, %cst_15 {dimension_numbers = #tpu.dot_dimension_numbers<[1], [0], [0], [1], [0, 0, 1, 1], [], []>} : vector<8x32xf32>, vector<32x128xf32>, vector<8x128xf32> -> vector<8x128xf32>
    %35 = arith.addf %33, %34 : vector<8x128xf32>
    %36 = vector.extract_strided_slice %35 {offsets = [0, 0], sizes = [8, 96], strides = [1, 1]} : vector<8x128xf32> to vector<8x96xf32>
    %cst_16 = arith.constant 5.000000e-01 : f32
    %37 = vector.broadcast %cst_16 : f32 to vector<8x96xf32>
    %38 = arith.mulf %37, %36 : vector<8x96xf32>
    %39 = math.tanh %38 : vector<8x96xf32>
    %cst_17 = arith.constant 1.000000e+00 : f32
    %40 = vector.broadcast %cst_17 : f32 to vector<8x96xf32>
    %41 = arith.addf %39, %40 : vector<8x96xf32>
    %cst_18 = arith.constant 5.000000e-01 : f32
    %42 = vector.broadcast %cst_18 : f32 to vector<8x96xf32>
    %43 = arith.mulf %42, %41 : vector<8x96xf32>
    %44 = vector.extract_strided_slice %35 {offsets = [0, 96], sizes = [8, 32], strides = [1, 1]} : vector<8x128xf32> to vector<8x32xf32>
    %45 = math.tanh %44 : vector<8x32xf32>
    %46 = vector.extract_strided_slice %43 {offsets = [0, 0], sizes = [8, 32], strides = [1, 1]} : vector<8x96xf32> to vector<8x32xf32>
    %47 = vector.extract_strided_slice %43 {offsets = [0, 32], sizes = [8, 32], strides = [1, 1]} : vector<8x96xf32> to vector<8x32xf32>
    %48 = vector.extract_strided_slice %43 {offsets = [0, 64], sizes = [8, 32], strides = [1, 1]} : vector<8x96xf32> to vector<8x32xf32>
    %49 = arith.mulf %47, %30 : vector<8x32xf32>
    %50 = arith.mulf %46, %45 : vector<8x32xf32>
    %51 = arith.addf %49, %50 : vector<8x32xf32>
    %52 = math.tanh %51 : vector<8x32xf32>
    %53 = arith.mulf %48, %52 : vector<8x32xf32>
    %54 = vector.extract_strided_slice %9 {offsets = [16, 0], sizes = [8, 128], strides = [1, 1]} : vector<64x128xf32> to vector<8x128xf32>
    %cst_19 = arith.constant dense<0.000000e+00> : vector<8x128xf32>
    %55 = tpu.matmul %53, %1, %cst_19 {dimension_numbers = #tpu.dot_dimension_numbers<[1], [0], [0], [1], [0, 0, 1, 1], [], []>} : vector<8x32xf32>, vector<32x128xf32>, vector<8x128xf32> -> vector<8x128xf32>
    %56 = arith.addf %54, %55 : vector<8x128xf32>
    %57 = vector.extract_strided_slice %56 {offsets = [0, 0], sizes = [8, 96], strides = [1, 1]} : vector<8x128xf32> to vector<8x96xf32>
    %cst_20 = arith.constant 5.000000e-01 : f32
    %58 = vector.broadcast %cst_20 : f32 to vector<8x96xf32>
    %59 = arith.mulf %58, %57 : vector<8x96xf32>
    %60 = math.tanh %59 : vector<8x96xf32>
    %cst_21 = arith.constant 1.000000e+00 : f32
    %61 = vector.broadcast %cst_21 : f32 to vector<8x96xf32>
    %62 = arith.addf %60, %61 : vector<8x96xf32>
    %cst_22 = arith.constant 5.000000e-01 : f32
    %63 = vector.broadcast %cst_22 : f32 to vector<8x96xf32>
    %64 = arith.mulf %63, %62 : vector<8x96xf32>
    %65 = vector.extract_strided_slice %56 {offsets = [0, 96], sizes = [8, 32], strides = [1, 1]} : vector<8x128xf32> to vector<8x32xf32>
    %66 = math.tanh %65 : vector<8x32xf32>
    %67 = vector.extract_strided_slice %64 {offsets = [0, 0], sizes = [8, 32], strides = [1, 1]} : vector<8x96xf32> to vector<8x32xf32>
    %68 = vector.extract_strided_slice %64 {offsets = [0, 32], sizes = [8, 32], strides = [1, 1]} : vector<8x96xf32> to vector<8x32xf32>
    %69 = vector.extract_strided_slice %64 {offsets = [0, 64], sizes = [8, 32], strides = [1, 1]} : vector<8x96xf32> to vector<8x32xf32>
    %70 = arith.mulf %68, %51 : vector<8x32xf32>
    %71 = arith.mulf %67, %66 : vector<8x32xf32>
    %72 = arith.addf %70, %71 : vector<8x32xf32>
    %73 = math.tanh %72 : vector<8x32xf32>
    %74 = arith.mulf %69, %73 : vector<8x32xf32>
    %75 = vector.extract_strided_slice %9 {offsets = [24, 0], sizes = [8, 128], strides = [1, 1]} : vector<64x128xf32> to vector<8x128xf32>
    %cst_23 = arith.constant dense<0.000000e+00> : vector<8x128xf32>
    %76 = tpu.matmul %74, %1, %cst_23 {dimension_numbers = #tpu.dot_dimension_numbers<[1], [0], [0], [1], [0, 0, 1, 1], [], []>} : vector<8x32xf32>, vector<32x128xf32>, vector<8x128xf32> -> vector<8x128xf32>
    %77 = arith.addf %75, %76 : vector<8x128xf32>
    %78 = vector.extract_strided_slice %77 {offsets = [0, 0], sizes = [8, 96], strides = [1, 1]} : vector<8x128xf32> to vector<8x96xf32>
    %cst_24 = arith.constant 5.000000e-01 : f32
    %79 = vector.broadcast %cst_24 : f32 to vector<8x96xf32>
    %80 = arith.mulf %79, %78 : vector<8x96xf32>
    %81 = math.tanh %80 : vector<8x96xf32>
    %cst_25 = arith.constant 1.000000e+00 : f32
    %82 = vector.broadcast %cst_25 : f32 to vector<8x96xf32>
    %83 = arith.addf %81, %82 : vector<8x96xf32>
    %cst_26 = arith.constant 5.000000e-01 : f32
    %84 = vector.broadcast %cst_26 : f32 to vector<8x96xf32>
    %85 = arith.mulf %84, %83 : vector<8x96xf32>
    %86 = vector.extract_strided_slice %77 {offsets = [0, 96], sizes = [8, 32], strides = [1, 1]} : vector<8x128xf32> to vector<8x32xf32>
    %87 = math.tanh %86 : vector<8x32xf32>
    %88 = vector.extract_strided_slice %85 {offsets = [0, 0], sizes = [8, 32], strides = [1, 1]} : vector<8x96xf32> to vector<8x32xf32>
    %89 = vector.extract_strided_slice %85 {offsets = [0, 32], sizes = [8, 32], strides = [1, 1]} : vector<8x96xf32> to vector<8x32xf32>
    %90 = vector.extract_strided_slice %85 {offsets = [0, 64], sizes = [8, 32], strides = [1, 1]} : vector<8x96xf32> to vector<8x32xf32>
    %91 = arith.mulf %89, %72 : vector<8x32xf32>
    %92 = arith.mulf %88, %87 : vector<8x32xf32>
    %93 = arith.addf %91, %92 : vector<8x32xf32>
    %94 = math.tanh %93 : vector<8x32xf32>
    %95 = arith.mulf %90, %94 : vector<8x32xf32>
    %96 = vector.extract_strided_slice %9 {offsets = [32, 0], sizes = [8, 128], strides = [1, 1]} : vector<64x128xf32> to vector<8x128xf32>
    %cst_27 = arith.constant dense<0.000000e+00> : vector<8x128xf32>
    %97 = tpu.matmul %95, %1, %cst_27 {dimension_numbers = #tpu.dot_dimension_numbers<[1], [0], [0], [1], [0, 0, 1, 1], [], []>} : vector<8x32xf32>, vector<32x128xf32>, vector<8x128xf32> -> vector<8x128xf32>
    %98 = arith.addf %96, %97 : vector<8x128xf32>
    %99 = vector.extract_strided_slice %98 {offsets = [0, 0], sizes = [8, 96], strides = [1, 1]} : vector<8x128xf32> to vector<8x96xf32>
    %cst_28 = arith.constant 5.000000e-01 : f32
    %100 = vector.broadcast %cst_28 : f32 to vector<8x96xf32>
    %101 = arith.mulf %100, %99 : vector<8x96xf32>
    %102 = math.tanh %101 : vector<8x96xf32>
    %cst_29 = arith.constant 1.000000e+00 : f32
    %103 = vector.broadcast %cst_29 : f32 to vector<8x96xf32>
    %104 = arith.addf %102, %103 : vector<8x96xf32>
    %cst_30 = arith.constant 5.000000e-01 : f32
    %105 = vector.broadcast %cst_30 : f32 to vector<8x96xf32>
    %106 = arith.mulf %105, %104 : vector<8x96xf32>
    %107 = vector.extract_strided_slice %98 {offsets = [0, 96], sizes = [8, 32], strides = [1, 1]} : vector<8x128xf32> to vector<8x32xf32>
    %108 = math.tanh %107 : vector<8x32xf32>
    %109 = vector.extract_strided_slice %106 {offsets = [0, 0], sizes = [8, 32], strides = [1, 1]} : vector<8x96xf32> to vector<8x32xf32>
    %110 = vector.extract_strided_slice %106 {offsets = [0, 32], sizes = [8, 32], strides = [1, 1]} : vector<8x96xf32> to vector<8x32xf32>
    %111 = vector.extract_strided_slice %106 {offsets = [0, 64], sizes = [8, 32], strides = [1, 1]} : vector<8x96xf32> to vector<8x32xf32>
    %112 = arith.mulf %110, %93 : vector<8x32xf32>
    %113 = arith.mulf %109, %108 : vector<8x32xf32>
    %114 = arith.addf %112, %113 : vector<8x32xf32>
    %115 = math.tanh %114 : vector<8x32xf32>
    %116 = arith.mulf %111, %115 : vector<8x32xf32>
    %117 = vector.extract_strided_slice %9 {offsets = [40, 0], sizes = [8, 128], strides = [1, 1]} : vector<64x128xf32> to vector<8x128xf32>
    %cst_31 = arith.constant dense<0.000000e+00> : vector<8x128xf32>
    %118 = tpu.matmul %116, %1, %cst_31 {dimension_numbers = #tpu.dot_dimension_numbers<[1], [0], [0], [1], [0, 0, 1, 1], [], []>} : vector<8x32xf32>, vector<32x128xf32>, vector<8x128xf32> -> vector<8x128xf32>
    %119 = arith.addf %117, %118 : vector<8x128xf32>
    %120 = vector.extract_strided_slice %119 {offsets = [0, 0], sizes = [8, 96], strides = [1, 1]} : vector<8x128xf32> to vector<8x96xf32>
    %cst_32 = arith.constant 5.000000e-01 : f32
    %121 = vector.broadcast %cst_32 : f32 to vector<8x96xf32>
    %122 = arith.mulf %121, %120 : vector<8x96xf32>
    %123 = math.tanh %122 : vector<8x96xf32>
    %cst_33 = arith.constant 1.000000e+00 : f32
    %124 = vector.broadcast %cst_33 : f32 to vector<8x96xf32>
    %125 = arith.addf %123, %124 : vector<8x96xf32>
    %cst_34 = arith.constant 5.000000e-01 : f32
    %126 = vector.broadcast %cst_34 : f32 to vector<8x96xf32>
    %127 = arith.mulf %126, %125 : vector<8x96xf32>
    %128 = vector.extract_strided_slice %119 {offsets = [0, 96], sizes = [8, 32], strides = [1, 1]} : vector<8x128xf32> to vector<8x32xf32>
    %129 = math.tanh %128 : vector<8x32xf32>
    %130 = vector.extract_strided_slice %127 {offsets = [0, 0], sizes = [8, 32], strides = [1, 1]} : vector<8x96xf32> to vector<8x32xf32>
    %131 = vector.extract_strided_slice %127 {offsets = [0, 32], sizes = [8, 32], strides = [1, 1]} : vector<8x96xf32> to vector<8x32xf32>
    %132 = vector.extract_strided_slice %127 {offsets = [0, 64], sizes = [8, 32], strides = [1, 1]} : vector<8x96xf32> to vector<8x32xf32>
    %133 = arith.mulf %131, %114 : vector<8x32xf32>
    %134 = arith.mulf %130, %129 : vector<8x32xf32>
    %135 = arith.addf %133, %134 : vector<8x32xf32>
    %136 = math.tanh %135 : vector<8x32xf32>
    %137 = arith.mulf %132, %136 : vector<8x32xf32>
    %138 = vector.extract_strided_slice %9 {offsets = [48, 0], sizes = [8, 128], strides = [1, 1]} : vector<64x128xf32> to vector<8x128xf32>
    %cst_35 = arith.constant dense<0.000000e+00> : vector<8x128xf32>
    %139 = tpu.matmul %137, %1, %cst_35 {dimension_numbers = #tpu.dot_dimension_numbers<[1], [0], [0], [1], [0, 0, 1, 1], [], []>} : vector<8x32xf32>, vector<32x128xf32>, vector<8x128xf32> -> vector<8x128xf32>
    %140 = arith.addf %138, %139 : vector<8x128xf32>
    %141 = vector.extract_strided_slice %140 {offsets = [0, 0], sizes = [8, 96], strides = [1, 1]} : vector<8x128xf32> to vector<8x96xf32>
    %cst_36 = arith.constant 5.000000e-01 : f32
    %142 = vector.broadcast %cst_36 : f32 to vector<8x96xf32>
    %143 = arith.mulf %142, %141 : vector<8x96xf32>
    %144 = math.tanh %143 : vector<8x96xf32>
    %cst_37 = arith.constant 1.000000e+00 : f32
    %145 = vector.broadcast %cst_37 : f32 to vector<8x96xf32>
    %146 = arith.addf %144, %145 : vector<8x96xf32>
    %cst_38 = arith.constant 5.000000e-01 : f32
    %147 = vector.broadcast %cst_38 : f32 to vector<8x96xf32>
    %148 = arith.mulf %147, %146 : vector<8x96xf32>
    %149 = vector.extract_strided_slice %140 {offsets = [0, 96], sizes = [8, 32], strides = [1, 1]} : vector<8x128xf32> to vector<8x32xf32>
    %150 = math.tanh %149 : vector<8x32xf32>
    %151 = vector.extract_strided_slice %148 {offsets = [0, 0], sizes = [8, 32], strides = [1, 1]} : vector<8x96xf32> to vector<8x32xf32>
    %152 = vector.extract_strided_slice %148 {offsets = [0, 32], sizes = [8, 32], strides = [1, 1]} : vector<8x96xf32> to vector<8x32xf32>
    %153 = vector.extract_strided_slice %148 {offsets = [0, 64], sizes = [8, 32], strides = [1, 1]} : vector<8x96xf32> to vector<8x32xf32>
    %154 = arith.mulf %152, %135 : vector<8x32xf32>
    %155 = arith.mulf %151, %150 : vector<8x32xf32>
    %156 = arith.addf %154, %155 : vector<8x32xf32>
    %157 = math.tanh %156 : vector<8x32xf32>
    %158 = arith.mulf %153, %157 : vector<8x32xf32>
    %159 = vector.extract_strided_slice %9 {offsets = [56, 0], sizes = [8, 128], strides = [1, 1]} : vector<64x128xf32> to vector<8x128xf32>
    %cst_39 = arith.constant dense<0.000000e+00> : vector<8x128xf32>
    %160 = tpu.matmul %158, %1, %cst_39 {dimension_numbers = #tpu.dot_dimension_numbers<[1], [0], [0], [1], [0, 0, 1, 1], [], []>} : vector<8x32xf32>, vector<32x128xf32>, vector<8x128xf32> -> vector<8x128xf32>
    %161 = arith.addf %159, %160 : vector<8x128xf32>
    %162 = vector.extract_strided_slice %161 {offsets = [0, 0], sizes = [8, 96], strides = [1, 1]} : vector<8x128xf32> to vector<8x96xf32>
    %cst_40 = arith.constant 5.000000e-01 : f32
    %163 = vector.broadcast %cst_40 : f32 to vector<8x96xf32>
    %164 = arith.mulf %163, %162 : vector<8x96xf32>
    %165 = math.tanh %164 : vector<8x96xf32>
    %cst_41 = arith.constant 1.000000e+00 : f32
    %166 = vector.broadcast %cst_41 : f32 to vector<8x96xf32>
    %167 = arith.addf %165, %166 : vector<8x96xf32>
    %cst_42 = arith.constant 5.000000e-01 : f32
    %168 = vector.broadcast %cst_42 : f32 to vector<8x96xf32>
    %169 = arith.mulf %168, %167 : vector<8x96xf32>
    %170 = vector.extract_strided_slice %161 {offsets = [0, 96], sizes = [8, 32], strides = [1, 1]} : vector<8x128xf32> to vector<8x32xf32>
    %171 = math.tanh %170 : vector<8x32xf32>
    %172 = vector.extract_strided_slice %169 {offsets = [0, 0], sizes = [8, 32], strides = [1, 1]} : vector<8x96xf32> to vector<8x32xf32>
    %173 = vector.extract_strided_slice %169 {offsets = [0, 32], sizes = [8, 32], strides = [1, 1]} : vector<8x96xf32> to vector<8x32xf32>
    %174 = vector.extract_strided_slice %169 {offsets = [0, 64], sizes = [8, 32], strides = [1, 1]} : vector<8x96xf32> to vector<8x32xf32>
    %175 = arith.mulf %173, %156 : vector<8x32xf32>
    %176 = arith.mulf %172, %171 : vector<8x32xf32>
    %177 = arith.addf %175, %176 : vector<8x32xf32>
    %178 = math.tanh %177 : vector<8x32xf32>
    %179 = arith.mulf %174, %178 : vector<8x32xf32>
    %180 = tpu.concatenate %32, %53, %74, %95, %116, %137, %158, %179 in 0 : vector<8x32xf32>, vector<8x32xf32>, vector<8x32xf32>, vector<8x32xf32>, vector<8x32xf32>, vector<8x32xf32>, vector<8x32xf32>, vector<8x32xf32> -> vector<64x32xf32>
    %cst_43 = arith.constant dense<0.000000e+00> : vector<64x128xf32>
    %181 = tpu.matmul %180, %3, %cst_43 {dimension_numbers = #tpu.dot_dimension_numbers<[1], [0], [0], [1], [0, 0, 1, 1], [], []>} : vector<64x32xf32>, vector<32x128xf32>, vector<64x128xf32> -> vector<64x128xf32>
    %182 = vector.broadcast %4 : vector<1x128xf32> to vector<64x128xf32>
    %183 = arith.addf %181, %182 : vector<64x128xf32>
    %cst_44 = arith.constant dense<0xFF800000> : vector<64xf32>
    %184 = vector.multi_reduction <maximumf>, %183, %cst_44 [1] : vector<64x128xf32> to vector<64xf32>
    %185 = vector.shape_cast %184 : vector<64xf32> to vector<64x1xf32>
    %186 = vector.broadcast %185 : vector<64x1xf32> to vector<64x128xf32>
    %187 = arith.subf %183, %186 : vector<64x128xf32>
    %188 = math.exp %187 : vector<64x128xf32>
    %cst_45 = arith.constant dense<0.000000e+00> : vector<64xf32>
    %189 = vector.multi_reduction <add>, %188, %cst_45 [1] : vector<64x128xf32> to vector<64xf32>
    %190 = vector.shape_cast %189 : vector<64xf32> to vector<64x1xf32>
    %191 = math.log %190 : vector<64x1xf32>
    %192 = vector.broadcast %191 : vector<64x1xf32> to vector<64x128xf32>
    %193 = arith.subf %187, %192 : vector<64x128xf32>
    %c0_46 = arith.constant 0 : index
    %c0_47 = arith.constant 0 : index
    %c0_48 = arith.constant 0 : index
    %194 = vector.load %arg4[%c0_46, %c0_47, %c0_48] : memref<1x64x128xf32, #tpu.memory_space<vmem>>, vector<1x64x128xf32>
    %195 = vector.shape_cast %194 : vector<1x64x128xf32> to vector<64x128xf32>
    %196 = vector.shape_cast %193 : vector<64x128xf32> to vector<1x64x128xf32>
    tpu.vector_store %arg4[%c0_46, %c0_47, %c0_48], %196 {strides = array<i32>} : memref<1x64x128xf32, #tpu.memory_space<vmem>>, vector<1x64x128xf32>,
    return
  }
  func.func @transform_0(%arg0: i32) -> (i32, i32, i32) {
    %c0_i32 = arith.constant 0 : i32
    %c0_i32_0 = arith.constant 0 : i32
    %c0_i32_1 = arith.constant 0 : i32
    return %arg0, %c0_i32, %c0_i32_0 : i32, i32, i32
  }
  func.func @transform_1(%arg0: i32) -> (i32, i32) {
    %c0_i32 = arith.constant 0 : i32
    %c0_i32_0 = arith.constant 0 : i32
    %c0_i32_1 = arith.constant 0 : i32
    return %c0_i32, %c0_i32_0 : i32, i32
  }
  func.func @transform_2(%arg0: i32) -> (i32, i32) {
    %c0_i32 = arith.constant 0 : i32
    %c0_i32_0 = arith.constant 0 : i32
    %c0_i32_1 = arith.constant 0 : i32
    return %c0_i32, %c0_i32_0 : i32, i32
  }
  func.func @transform_3(%arg0: i32) -> (i32, i32, i32) {
    %c0_i32 = arith.constant 0 : i32
    %c0_i32_0 = arith.constant 0 : i32
    %c0_i32_1 = arith.constant 0 : i32
    return %arg0, %c0_i32, %c0_i32_0 : i32, i32, i32
  }
}

</mosaic_0001>

<bundles_post_ra>
// kernel: tpu_custom_call.1
= control target key start
LH: loop header
LB: loop body
LE: loop exit
PB: predicated region body
PF: predicated region fallthrough
CT: control target
= control target key end

     0   :  { %8 = vsyncpa [#allocation3], 0  ;;  %s2200_s0 = inlined_call_operand.vmem [shape: f32[2,64,16], index: 0, kind: input, shape index: {}]   ;;  %s2201_s1 = inlined_call_operand.vmem [shape: f32[49,128], index: 1, kind: input, shape index: {}]   ;;  %s2202_s2 = inlined_call_operand.vmem [shape: f32[33,128], index: 2, kind: input, shape index: {}]   ;;  %s2203_s3 = inlined_call_operand.hbm [shape: f32[2,64,128], index: 3, kind: output, shape index: {}]  }
   0x1   :  { %10 = vsyncpa [#allocation3 + $0x1], 0  ;;  %s1827_s12 = smov 0   ;;  %s1829_s13 = smov 0  }
   0x2   :  { %s1831_s14 = smov 0   ;;  %s1833_s15 = smov 0  }
   0x3 LB: > { %s1848_s16 = sadd.s32 4294967295, %s1798_s15   ;;  %s1384_s17 = sadd.s32 4294967294, %s1798_s15   ;;  %s1798_s15 = sphi %s1833_s15, %s2209_s15   ;;  %s1794_s14 = sphi %s1831_s14, %s2208_s14   ;;  %s1790_s13 = sphi %s1829_s13, %s2207_s13   ;;  %s1786_s12 = sphi %s1827_s12, %s2206_s12  }
   0x4   : > { %s1852_s18 = sadd.s32 1, %s1798_s15   ;;  %s91_s19 = sadd.s32 1, %s1794_s14 }
   0x5   : > { %s88_s20 = ssub.s32 %s1798_s15, %s1852_s18  ;;  %p101_p0 = scmp.ne.s32.totalorder %s1794_s14, %s1790_s13 }
   0x6   : > { %p89_p1 = scmp.eq.s32.totalorder %s88_s20, 0  ;;  %p102_p2 = scmp.eq.s32.totalorder %s1848_s16, 1 }
   0x7   : > { %p107_p3 = scmp.ne.s32.totalorder %s1790_s13, %s1786_s12  ;;  %p108_p4 = scmp.eq.s32.totalorder %s1384_s17, 1 }
   0x8   : > { %s1863_s21 = scalar_select %p89_p1, %s1794_s14, %s91_s19  }
   0x9   : > { %p1865_p5 = por %p102_p2, %p101_p0  ;;  %p1869_p6 = por %p108_p4, %p107_p3 }
   0xa   : > { %p1387_p7 = scmp.ge.s32.totalorder %s1798_s15, 1  ;;  %p140_p8 = scmp.lt.s32.totalorder %s1798_s15, 3 }
   0xc   : > { %p141_p9 = pnand %p1387_p7, %p140_p8 }
   0xd   : > { %p164_p10 = scmp.lt.s32.totalorder (!%p141_p9), %s1848_s16, 1  ;;  %s1802_s25 = smov (!%p141_p9), 32  }
   0xe   : > { %144 = sbr.rel (%p141_p9) target bundleno = 6069 (0x17b5), region = 32  ;;  %s1803_s26 = smov (!%p141_p9), 64  }
   0xf   : > { %s161_s10 = sand.u32 (!%p141_p9), 1, %s1790_s13   ;;  %s1422_s19 = sshll.u32 (!%p141_p9), %s1848_s16, 10 }
  0x10   : > { %s1388_s11 = sshll.u32 (!%p141_p9), %s161_s10, 6 }
  0x11   : > { %s2133_s17 = scalar_lea.vmem (!%p141_p9), [#allocation2], %s1388_s11 }
  0x12   : > { %s1322_s20 = sshll.u32 (!%p141_p9), %s2133_s17, 4  ;;  %s2154_s20 = int_to_ptr.vmem [resolvable:$true] %s1322_s20 }
  0x13   : > { %v170_v0 = vld [vmem:[%s2201_s1 + $0x8] sm:$0xff]  ;;  %v169_v1 = vld [vmem:[%s2201_s1] sm:$0xff]  ;;  %s165_s28 = scalar_select %p164_p10, %s1848_s16, 1  ;;  %vm193_vm0 = vcmask 130048   ;;  %v1800_v2 = vmov 0.0   ;;  %v1916_v11 = vld [vmem:[%s2201_s1 + $0x18] sm:$0xff] }
  0x14   : > { %1609 = vmatprep.subr.mxu1 %v170_v0  ;;  %1485 = vmatprep.subr.mxu0 %v170_v0  ;;  %v1892_v3 = vld [vmem:[%s2201_s1 + $0x28] sm:$0xff]  ;;  %v1907_v9 = vld [vmem:[%s2201_s1 + $0x20] sm:$0xff]  ;;  %v1926_v12 = vld [vmem:[%s2201_s1 + $0x10] sm:$0xff]  ;;  %vm1801_vm1 = vmmov 0   ;;  %vm323_vm2 = vcmask 261120   ;;  %s2160_s16 = scalar_lea.sflag [#allocation3], %s161_s10 }
  0x15   : > { %1611 = vmatpush3.msra.mxu1 %v170_v0  ;;  %1486 = vmatpush3.msra.mxu0 %v170_v0  ;;  %s1421_s29 = sshll.u32 %s165_s28, 6  ;;  %v1960_v18 = vld [vmem:[%s2201_s1 + $0x30] ss:$0 sm:$0xff]  ;;  %s1738_s27 = scalar_lea.vmem %s2154_s20, 1024 }
  0x16   : > { %1610 = vmatprep.subr.mxu1 %v169_v1  ;;  %1487 = vmatprep.subr.mxu0 %v169_v1  ;;  %s1886_s5 = scalar_lea.vmem %s2200_s0, %s1421_s29  ;;  %p1739_p11 = scmp.ne.s32.totalorder %s2154_s20, %s1738_s27 }
  0x17   : > { %1612 = vmatpush3.msra.mxu1 %v169_v1  ;;  %1488 = vmatpush3.msra.mxu0 %v169_v1  ;;  %v185_v4 = vld [vmem:[%s1886_s5 + $0x20] sm:$0xff]  ;;  %v186_v5 = vld [vmem:[%s1886_s5 + $0x28] sm:$0xff]  ;;  %v187_v8 = vld [vmem:[%s1886_s5 + $0x30] sm:$0xff]  ;;  %s1804_s28 = smov [#allocation2]  }
  0x18   : > { %1501 = vmatprep.subr.mxu1 %v1800_v2  ;;  %1523 = vmatprep.subr.mxu0 %v1800_v2  ;;  %v181_v6 = vld [vmem:[%s1886_s5] sm:$0xff]  ;;  %v182_v7 = vld [vmem:[%s1886_s5 + $0x8] sm:$0xff]  ;;  %v188_v10 = vld [vmem:[%s1886_s5 + $0x38] sm:$0xff]  ;;  %p1740_p12 = pnand %p1739_p11, %p1865_p5  ;;  %s1742_s29 = sshll.u32 %s1804_s28, 4  ;;  %s1743_s29 = int_to_ptr.vmem [resolvable:$false] %s1742_s29 }
  0x19   : > { %1495 = vmatprep.mubr.msk.f32.mxu1 %vm193_vm0, %v185_v4  ;;  %1489 = vmatprep.mubr.msk.f32.mxu0 %vm193_vm0, %v181_v6  ;;  %v183_v52 = vld [vmem:[%s1886_s5 + $0x10] sm:$0xff]  ;;  %v184_v53 = vld [vmem:[%s1886_s5 + $0x18] sm:$0xff]  ;;  %s1744_s30 = scalar_lea.vmem %s1743_s29, 2048  ;;  %p1745_p0 = scmp.lt.s32.totalorder %s2154_s20, %s1743_s29 }
  0x1a   : > { %1496 = vmatmul.mubr.msk.f32.vlgmr.msra.gmra.mxu1 %vm193_vm0, %v186_v5  ;;  %1490 = vmatmul.mubr.msk.f32.vlgmr.msra.gmra.mxu0 %vm193_vm0, %v182_v7  ;;  %p1741_p13 = pneg %p1740_p12  ;;  %p1746_p1 = scmp.lt.s32.totalorder %s1744_s30, %s1738_s27 }
  0x1b   : > { %1502 = vmatpush3.msra.mxu1 %v1892_v3  ;;  %1498 = vmatprep.mubr.msk.f32.mxu1 %vm193_vm0, %v187_v8 }
  0x1c   : > { %1503 = vmatprep.subr.mxu1 %v1800_v2  ;;  %1524 = vmatpush3.msra.mxu0 %v1892_v3  ;;  %p1747_p2 = por %p1746_p1, %p1745_p0 }
  0x1d   : > { %1504 = vmatpush3.msra.mxu1 %v1907_v9  ;;  %1525 = vmatprep.subr.mxu0 %v1800_v2 }
  0x1e   : > { %1505 = vmatprep.subr.mxu1 %v1800_v2  ;;  %1499 = vmatmul.mubr.msk.f32.gmra.mxu1 %vm193_vm0, %v188_v10  ;;  %p1748_p3 = pnand %p1747_p2, %p1741_p13 }
  0x1f   : > { %1506 = vmatpush3.msra.mxu1 %v1916_v11  ;;  %1509 = vmatprep.mubr.msk.f32.mxu1 %vm1801_vm1, %v1800_v2 }
  0x20   : > { %1507 = vmatprep.subr.mxu1 %v1800_v2  ;;  %1526 = vmatpush3.msra.mxu0 %v1907_v9 }
  0x21   : > { %1508 = vmatpush3.msra.mxu1 %v1926_v12  ;;  %1527 = vmatprep.subr.mxu0 %v1800_v2 }
  0x22   : > { %1510 = vmatmul.mubr.f32.vlgmr.msra.gmra.mxu1 %v1800_v2  ;;  %1512 = vmatprep.subr.mxu1 %v1800_v2 }
  0x23   : > { %1513 = vmatpush3.msra.mxu1 %v1892_v3  ;;  %1520 = vmatprep.mubr.msk.f32.mxu1 %vm1801_vm1, %v1800_v2 }
  0x24   : > { %1514 = vmatprep.subr.mxu1 %v1800_v2  ;;  %1528 = vmatpush3.msra.mxu0 %v1916_v11 }
  0x25   : > { %1515 = vmatpush3.msra.mxu1 %v1907_v9  ;;  %1529 = vmatprep.subr.mxu0 %v1800_v2 }
  0x26   : > { %1516 = vmatprep.subr.mxu1 %v1800_v2  ;;  %1530 = vmatpush3.msra.mxu0 %v1926_v12 }
  0x27   : > { %1517 = vmatpush3.msra.mxu1 %v1916_v11  ;;  %1545 = vmatprep.subr.mxu0 %v1800_v2 }
  0x28   : > { %1518 = vmatprep.subr.mxu1 %v1800_v2  ;;  %1492 = vmatprep.mubr.msk.f32.mxu0 %vm193_vm0, %v183_v52 }
  0x29   : > { %1519 = vmatpush3.msra.mxu1 %v1926_v12  ;;  %1493 = vmatmul.mubr.msk.f32.gmra.mxu0 %vm193_vm0, %v184_v53 }
  0x2a   : > { %1534 = vmatprep.subr.mxu1 %v1800_v2  ;;  %1531 = vmatprep.mubr.msk.f32.mxu0 %vm1801_vm1, %v1800_v2 }
  0xda   : > { %v1951_v13 = vpop.f32.mrf.mxu1  ;;  %v1491_v14 = vpop.f32.mrf.mxu0 }
  0xdb   : > { %v290_v38 = vadd.f32 %v1491_v14, %v1960_v18 }
  0xdc   : > { %v1953_v15 = vpop.f32.mrf.mxu1  ;;  %v284_v16 = vpop.f32.mrf.mxu0 }
  0xdd   : > { %v285_v20 = vadd.f32 %v1960_v18, %v284_v16 }
  0xde   : > { %v1955_v17 = vpop.f32.mrf.mxu1 }
  0xe0   : > { %v1962_v19 = vpop.f32.mrf.mxu1 }
  0xe2   : > { %v393_v21 = vpop.f32.mrf.mxu1 }
  0xe3   : > { %v397_v22 = vadd.f32 %v393_v21, %v285_v20 }
  0xe4   : > { %v1511_v23 = vpop.f32.mrf.mxu1 }
  0xe5   : > { %1658 = vtanh.f32 %v397_v22  ;;  %v398_v25 = vmul.f32 0.5, %v397_v22 }
  0xe7   : > { %1660 = vtanh.f32 %v398_v25 }
  0xe9   : > { %v1494_v58 = vpop.f32.mrf.mxu0 }
  0xeb   : > { %v294_v59 = vpop.f32.mrf.mxu0 }
  0xec   : > { %v295_v60 = vadd.f32 %v1960_v18, %v294_v59 }
  0xf2   : > { %v1659_v24 = vpop.eup %1658 }
  0xf3   : > { %405 = vrot.lane.b32.xlu0 %v1659_v24, %s1802_s25  ;;  %v300_v24 = vadd.f32 %v1494_v58, %v1960_v18 }
  0xf4   : > { %v1661_v26 = vpop.eup %1660 }
  0xf5   : > { %v400_v27 = vadd.f32 1.0, %v1661_v26 }
  0xf7   : > { %v401_v28 = vmul.f32 0.5, %v400_v27 }
  0xf9   : > { %v403_v31 = vmul.f32 0.0, %v401_v28 }
 0x165   : > { %v406_v29 = vpop.permute.xlu0 %405 }
 0x166   : > { %v408_v30 = vmul.f32 %v406_v29, %v401_v28 }
 0x168   : > { %410 = vrot.lane.b32.xlu0 %v408_v30, %s1802_s25 }
 0x1da   : > { %v411_v32 = vpop.permute.xlu0 %410 }
 0x1db   : > { %v413_v33 = vadd.f32 %v411_v32, %v403_v31 }
 0x1dd   : > { %1662 = vtanh.f32 %v413_v33 }
 0x1ea   : > { %v1663_v34 = vpop.eup %1662 }
 0x1eb   : > { %416 = vrot.lane.b32.xlu1 %v1663_v34, %s1802_s25 }
 0x25d   : > { %v417_v35 = vpop.permute.xlu1 %416 }
 0x25e   : > { %v419_v36 = vmul.f32 %v417_v35, %v401_v28 }
 0x260   : > { %421 = vrot.lane.b32.xlu1 %v419_v36, %s1803_s26 }
 0x2d2   : > { %v1969_v37 = vpop.permute.xlu1 %421 }
 0x2d3   : > { %1521 = vmatmul.mubr.msk.f32.vlgmr.msra.gmra.mxu1 %vm323_vm2, %v1969_v37 }
 0x2d4   : > { %1535 = vmatpush3.msra.mxu1 %v1892_v3  ;;  %1542 = vmatprep.mubr.msk.f32.mxu1 %vm1801_vm1, %v1800_v2 }
 0x2d5   : > { %1536 = vmatprep.subr.mxu1 %v1800_v2 }
 0x2d6   : > { %1537 = vmatpush3.msra.mxu1 %v1907_v9 }
 0x2d7   : > { %1538 = vmatprep.subr.mxu1 %v1800_v2 }
 0x2d8   : > { %1539 = vmatpush3.msra.mxu1 %v1916_v11 }
 0x2d9   : > { %1540 = vmatprep.subr.mxu1 %v1800_v2 }
 0x2da   : > { %1541 = vmatpush3.msra.mxu1 %v1926_v12 }
 0x2db   : > { %1556 = vmatprep.subr.mxu1 %v1800_v2 }
 0x393   : > { %v491_v39 = vpop.f32.mrf.mxu1 }
 0x394   : > { %v495_v40 = vadd.f32 %v491_v39, %v290_v38 }
 0x395   : > { %v1522_v41 = vpop.f32.mrf.mxu1 }
 0x396   : > { %1664 = vtanh.f32 %v495_v40  ;;  %v496_v43 = vmul.f32 0.5, %v495_v40 }
 0x398   : > { %1666 = vtanh.f32 %v496_v43  ;;  %v305_v43 = vadd.f32 %v1960_v18, %v1953_v15 }
 0x3a3   : > { %v1665_v42 = vpop.eup %1664 }
 0x3a4   : > { %503 = vrot.lane.b32.xlu0 %v1665_v42, %s1802_s25 }
 0x3a5   : > { %v1667_v44 = vpop.eup %1666 }
 0x3a6   : > { %v498_v45 = vadd.f32 1.0, %v1667_v44 }
 0x3a8   : > { %v499_v46 = vmul.f32 0.5, %v498_v45 }
 0x3aa   : > { %v501_v49 = vmul.f32 %v499_v46, %v413_v33 }
 0x416   : > { %v504_v47 = vpop.permute.xlu0 %503 }
 0x417   : > { %v506_v48 = vmul.f32 %v504_v47, %v499_v46 }
 0x419   : > { %508 = vrot.lane.b32.xlu1 %v506_v48, %s1802_s25 }
 0x48b   : > { %v509_v50 = vpop.permute.xlu1 %508 }
 0x48c   : > { %v511_v51 = vadd.f32 %v509_v50, %v501_v49 }
 0x48e   : > { %1668 = vtanh.f32 %v511_v51 }
 0x49b   : > { %v1669_v54 = vpop.eup %1668 }
 0x49c   : > { %514 = vrot.lane.b32.xlu0 %v1669_v54, %s1802_s25 }
 0x50e   : > { %v515_v55 = vpop.permute.xlu0 %514 }
 0x50f   : > { %v517_v56 = vmul.f32 %v515_v55, %v499_v46 }
 0x511   : > { %519 = vrot.lane.b32.xlu1 %v517_v56, %s1803_s26 }
 0x583   : > { %v1994_v57 = vpop.permute.xlu1 %519 }
 0x584   : > { %1532 = vmatmul.mubr.msk.f32.vlgmr.msra.gmra.mxu0 %vm323_vm2, %v1994_v57 }
 0x585   : > { %1546 = vmatpush3.msra.mxu0 %v1892_v3  ;;  %1553 = vmatprep.mubr.msk.f32.mxu0 %vm1801_vm1, %v1800_v2 }
 0x586   : > { %1547 = vmatprep.subr.mxu0 %v1800_v2 }
 0x587   : > { %1548 = vmatpush3.msra.mxu0 %v1907_v9 }
 0x588   : > { %1549 = vmatprep.subr.mxu0 %v1800_v2 }
 0x589   : > { %1550 = vmatpush3.msra.mxu0 %v1916_v11 }
 0x58a   : > { %1551 = vmatprep.subr.mxu0 %v1800_v2 }
 0x58b   : > { %1552 = vmatpush3.msra.mxu0 %v1926_v12 }
 0x58c   : > { %1567 = vmatprep.subr.mxu0 %v1800_v2 }
 0x644   : > { %v589_v61 = vpop.f32.mrf.mxu0 }
 0x645   : > { %v593_v62 = vadd.f32 %v589_v61, %v295_v60  ;;  %v310_v61 = vadd.f32 %v1951_v13, %v1960_v18  ;;  %v179_v13 = vld [vmem:[%s2202_s2 + $0x18] sm:$0xff] }
 0x646   : > { %v1533_v63 = vpop.f32.mrf.mxu0 }
 0x647   : > { %1670 = vtanh.f32 %v593_v62  ;;  %v594_v1 = vmul.f32 0.5, %v593_v62 }
 0x649   : > { %1672 = vtanh.f32 %v594_v1 }
 0x654   : > { %v1671_v0 = vpop.eup %1670 }
 0x655   : > { %601 = vrot.lane.b32.xlu0 %v1671_v0, %s1802_s25 }
 0x656   : > { %v1673_v4 = vpop.eup %1672 }
 0x657   : > { %v596_v5 = vadd.f32 1.0, %v1673_v4 }
 0x659   : > { %v597_v6 = vmul.f32 0.5, %v596_v5 }
 0x65b   : > { %v599_v10 = vmul.f32 %v597_v6, %v511_v51 }
 0x6c7   : > { %v602_v7 = vpop.permute.xlu0 %601 }
 0x6c8   : > { %v604_v8 = vmul.f32 %v602_v7, %v597_v6 }
 0x6ca   : > { %606 = vrot.lane.b32.xlu1 %v604_v8, %s1802_s25 }
 0x73c   : > { %v607_v14 = vpop.permute.xlu1 %606 }
 0x73d   : > { %v609_v16 = vadd.f32 %v607_v14, %v599_v10 }
 0x73f   : > { %1674 = vtanh.f32 %v609_v16 }
 0x74c   : > { %v1675_v20 = vpop.eup %1674 }
 0x74d   : > { %612 = vrot.lane.b32.xlu0 %v1675_v20, %s1802_s25  ;;  %v178_v20 = vld [vmem:[%s2202_s2 + $0x10] sm:$0xff] }
 0x7bf   : > { %v613_v21 = vpop.permute.xlu0 %612 }
 0x7c0   : > { %v615_v22 = vmul.f32 %v613_v21, %v597_v6  ;;  %v177_v21 = vld [vmem:[%s2202_s2 + $0x8] sm:$0xff] }
 0x7c2   : > { %617 = vrot.lane.b32.xlu1 %v615_v22, %s1803_s26  ;;  %v176_v22 = vld [vmem:[%s2202_s2] sm:$0xff] }
 0x834   : > { %v2013_v23 = vpop.permute.xlu1 %617 }
 0x835   : > { %1543 = vmatmul.mubr.msk.f32.vlgmr.msra.gmra.mxu1 %vm323_vm2, %v2013_v23 }
 0x836   : > { %1557 = vmatpush3.msra.mxu1 %v1892_v3  ;;  %1564 = vmatprep.mubr.msk.f32.mxu1 %vm1801_vm1, %v1800_v2 }
 0x837   : > { %1558 = vmatprep.subr.mxu1 %v1800_v2 }
 0x838   : > { %1559 = vmatpush3.msra.mxu1 %v1907_v9 }
 0x839   : > { %1560 = vmatprep.subr.mxu1 %v1800_v2 }
 0x83a   : > { %1561 = vmatpush3.msra.mxu1 %v1916_v11 }
 0x83b   : > { %1562 = vmatprep.subr.mxu1 %v1800_v2 }
 0x83c   : > { %1563 = vmatpush3.msra.mxu1 %v1926_v12 }
 0x83d   : > { %1578 = vmatprep.subr.mxu1 %v1800_v2 }
 0x8f5   : > { %v687_v25 = vpop.f32.mrf.mxu1 }
 0x8f6   : > { %v691_v26 = vadd.f32 %v687_v25, %v300_v24 }
 0x8f7   : > { %v1544_v27 = vpop.f32.mrf.mxu1 }
 0x8f8   : > { %1676 = vtanh.f32 %v691_v26  ;;  %v692_v29 = vmul.f32 0.5, %v691_v26 }
 0x8fa   : > { %1678 = vtanh.f32 %v692_v29 }
 0x905   : > { %v1677_v28 = vpop.eup %1676 }
 0x906   : > { %699 = vrot.lane.b32.xlu0 %v1677_v28, %s1802_s25 }
 0x907   : > { %v1679_v30 = vpop.eup %1678 }
 0x908   : > { %v694_v31 = vadd.f32 1.0, %v1679_v30 }
 0x90a   : > { %v695_v32 = vmul.f32 0.5, %v694_v31 }
 0x90c   : > { %v697_v35 = vmul.f32 %v695_v32, %v609_v16 }
 0x978   : > { %v700_v33 = vpop.permute.xlu0 %699 }
 0x979   : > { %v702_v34 = vmul.f32 %v700_v33, %v695_v32 }
 0x97b   : > { %704 = vrot.lane.b32.xlu1 %v702_v34, %s1802_s25 }
 0x9ed   : > { %v705_v36 = vpop.permute.xlu1 %704 }
 0x9ee   : > { %v707_v38 = vadd.f32 %v705_v36, %v697_v35 }
 0x9f0   : > { %1680 = vtanh.f32 %v707_v38 }
 0x9fd   : > { %v1681_v39 = vpop.eup %1680 }
 0x9fe   : > { %710 = vrot.lane.b32.xlu0 %v1681_v39, %s1802_s25  ;;  %v320_v39 = vadd.f32 %v1955_v17, %v1960_v18 }
 0xa70   : > { %v711_v40 = vpop.permute.xlu0 %710 }
 0xa71   : > { %v713_v41 = vmul.f32 %v711_v40, %v695_v32 }
 0xa73   : > { %715 = vrot.lane.b32.xlu1 %v713_v41, %s1803_s26 }
 0xae5   : > { %v2032_v42 = vpop.permute.xlu1 %715 }
 0xae6   : > { %1554 = vmatmul.mubr.msk.f32.vlgmr.msra.gmra.mxu0 %vm323_vm2, %v2032_v42 }
 0xae7   : > { %1568 = vmatpush3.msra.mxu0 %v1892_v3  ;;  %1575 = vmatprep.mubr.msk.f32.mxu0 %vm1801_vm1, %v1800_v2 }
 0xae8   : > { %1569 = vmatprep.subr.mxu0 %v1800_v2 }
 0xae9   : > { %1570 = vmatpush3.msra.mxu0 %v1907_v9 }
 0xaea   : > { %1571 = vmatprep.subr.mxu0 %v1800_v2 }
 0xaeb   : > { %1572 = vmatpush3.msra.mxu0 %v1916_v11 }
 0xaec   : > { %1573 = vmatprep.subr.mxu0 %v1800_v2 }
 0xaed   : > { %1574 = vmatpush3.msra.mxu0 %v1926_v12 }
 0xaee   : > { %1589 = vmatprep.subr.mxu0 %v179_v13 }
 0xba6   : > { %v785_v44 = vpop.f32.mrf.mxu0 }
 0xba7   : > { %v789_v45 = vadd.f32 %v785_v44, %v305_v43 }
 0xba8   : > { %v1555_v46 = vpop.f32.mrf.mxu0 }
 0xba9   : > { %1682 = vtanh.f32 %v789_v45  ;;  %v790_v48 = vmul.f32 0.5, %v789_v45 }
 0xbab   : > { %1684 = vtanh.f32 %v790_v48 }
 0xbb6   : > { %v1683_v47 = vpop.eup %1682 }
 0xbb7   : > { %797 = vrot.lane.b32.xlu0 %v1683_v47, %s1802_s25 }
 0xbb8   : > { %v1685_v49 = vpop.eup %1684 }
 0xbb9   : > { %v792_v50 = vadd.f32 1.0, %v1685_v49 }
 0xbbb   : > { %v793_v51 = vmul.f32 0.5, %v792_v50 }
 0xbbd   : > { %v795_v54 = vmul.f32 %v793_v51, %v707_v38 }
 0xc29   : > { %v798_v52 = vpop.permute.xlu0 %797 }
 0xc2a   : > { %v800_v53 = vmul.f32 %v798_v52, %v793_v51 }
 0xc2c   : > { %802 = vrot.lane.b32.xlu1 %v800_v53, %s1802_s25 }
 0xc9e   : > { %v803_v55 = vpop.permute.xlu1 %802 }
 0xc9f   : > { %v805_v56 = vadd.f32 %v803_v55, %v795_v54  ;;  %v1407_v55 = vld [vmem:[%s2202_s2 + $0x20] ss:$0 sm:$0xff] }
 0xca1   : > { %1686 = vtanh.f32 %v805_v56 }
 0xcae   : > { %v1687_v15 = vpop.eup %1686 }
 0xcaf   : > { %808 = vrot.lane.b32.xlu0 %v1687_v15, %s1802_s25 }
 0xd21   : > { %v809_v58 = vpop.permute.xlu0 %808 }
 0xd22   : > { %v811_v59 = vmul.f32 %v809_v58, %v793_v51 }
 0xd24   : > { %813 = vrot.lane.b32.xlu1 %v811_v59, %s1803_s26 }
 0xd96   : > { %v814_v60 = vpop.permute.xlu1 %813 }
 0xd97   : > { %1565 = vmatmul.mubr.msk.f32.vlgmr.msra.gmra.mxu1 %vm323_vm2, %v814_v60 }
 0xd98   : > { %1579 = vmatpush3.msra.mxu1 %v1892_v3  ;;  %1586 = vmatprep.mubr.msk.f32.mxu1 %vm1801_vm1, %v1800_v2 }
 0xd99   : > { %1580 = vmatprep.subr.mxu1 %v1800_v2 }
 0xd9a   : > { %1581 = vmatpush3.msra.mxu1 %v1907_v9 }
 0xd9b   : > { %1582 = vmatprep.subr.mxu1 %v1800_v2 }
 0xd9c   : > { %1583 = vmatpush3.msra.mxu1 %v1916_v11 }
 0xd9d   : > { %1584 = vmatprep.subr.mxu1 %v1800_v2 }
 0xd9e   : > { %1585 = vmatpush3.msra.mxu1 %v1926_v12 }
 0xe57   : > { %v883_v62 = vpop.f32.mrf.mxu1 }
 0xe58   : > { %v887_v3 = vadd.f32 %v883_v62, %v310_v61 }
 0xe59   : > { %v1566_v63 = vpop.f32.mrf.mxu1 }
 0xe5a   : > { %1688 = vtanh.f32 %v887_v3  ;;  %v888_v1 = vmul.f32 0.5, %v887_v3 }
 0xe5c   : > { %1690 = vtanh.f32 %v888_v1 }
 0xe67   : > { %v1689_v0 = vpop.eup %1688 }
 0xe68   : > { %895 = vrot.lane.b32.xlu0 %v1689_v0, %s1802_s25 }
 0xe69   : > { %v1691_v9 = vpop.eup %1690 }
 0xe6a   : > { %v890_v4 = vadd.f32 1.0, %v1691_v9 }
 0xe6c   : > { %v891_v5 = vmul.f32 0.5, %v890_v4 }
 0xe6e   : > { %v893_v2 = vmul.f32 %v891_v5, %v805_v56 }
 0xeda   : > { %v896_v11 = vpop.permute.xlu0 %895 }
 0xedb   : > { %v898_v6 = vmul.f32 %v896_v11, %v891_v5 }
 0xedd   : > { %900 = vrot.lane.b32.xlu1 %v898_v6, %s1802_s25 }
 0xf4f   : > { %v901_v12 = vpop.permute.xlu1 %900 }
 0xf50   : > { %v903_v7 = vadd.f32 %v901_v12, %v893_v2 }
 0xf52   : > { %1692 = vtanh.f32 %v903_v7 }
 0xf5f   : > { %v1693_v8 = vpop.eup %1692 }
 0xf60   : > { %906 = vrot.lane.b32.xlu0 %v1693_v8, %s1802_s25 }
 0xfd2   : > { %v907_v10 = vpop.permute.xlu0 %906 }
 0xfd3   : > { %v909_v14 = vmul.f32 %v907_v10, %v891_v5 }
 0xfd5   : > { %911 = vrot.lane.b32.xlu1 %v909_v14, %s1803_s26 }
0x1047   : > { %v912_v16 = vpop.permute.xlu1 %911 }
0x1048   : > { %1576 = vmatmul.mubr.msk.f32.vlgmr.msra.gmra.mxu0 %vm323_vm2, %v912_v16 }
0x1049   : > { %1590 = vmatpush3.msra.mxu0 %v179_v13  ;;  %1597 = vmatprep.mubr.msk.f32.mxu0 %vm323_vm2, %v1969_v37  ;;  %v315_v37 = vadd.f32 %v1960_v18, %v1962_v19 }
0x104a   : > { %1591 = vmatprep.subr.mxu0 %v178_v20 }
0x104b   : > { %1592 = vmatpush3.msra.mxu0 %v178_v20 }
0x104c   : > { %1593 = vmatprep.subr.mxu0 %v177_v21 }
0x104d   : > { %1594 = vmatpush3.msra.mxu0 %v177_v21 }
0x104e   : > { %1595 = vmatprep.subr.mxu0 %v176_v22 }
0x104f   : > { %1596 = vmatpush3.msra.mxu0 %v176_v22 }
0x1050   : > { %1598 = vmatmul.mubr.msk.f32.vlgmr.msra.gmra.mxu0 %vm323_vm2, %v1994_v57 }
0x1051   : > { %1600 = vmatprep.mubr.msk.f32.mxu0 %vm323_vm2, %v2013_v23 }
0x1054   : > { %1601 = vmatmul.mubr.msk.f32.gmra.mxu0 %vm323_vm2, %v2032_v42 }
0x1055   : > { %1603 = vmatprep.mubr.msk.f32.mxu0 %vm323_vm2, %v814_v60 }
0x1058   : > { %1604 = vmatmul.mubr.msk.f32.gmra.mxu0 %vm323_vm2, %v912_v16 }
0x1108   : > { %v981_v24 = vpop.f32.mrf.mxu0 }
0x1109   : > { %v985_v25 = vadd.f32 %v981_v24, %v315_v37 }
0x110a   : > { %v1577_v26 = vpop.f32.mrf.mxu0 }
0x110b   : > { %1694 = vtanh.f32 %v985_v25  ;;  %v986_v57 = vmul.f32 0.5, %v985_v25 }
0x110d   : > { %1696 = vtanh.f32 %v986_v57 }
0x1110   : > { %v1599_v18 = vpop.f32.mrf.mxu0 }
0x1111   : > { %v1187_v63 = vadd.f32 %v1599_v18, %v1407_v55 }
0x1112   : > { %v1181_v53 = vpop.f32.mrf.mxu0 }
0x1113   : > { %v1182_v56 = vadd.f32 %v1407_v55, %v1181_v53 }
0x1114   : > { %v1602_v54 = vpop.f32.mrf.mxu0 }
0x1115   : > { %v1197_v59 = vadd.f32 %v1602_v54, %v1407_v55 }
0x1116   : > { %v1191_v15 = vpop.f32.mrf.mxu0 }
0x1117   : > { %v1192_v58 = vadd.f32 %v1407_v55, %v1191_v15 }
0x1118   : > { %v1695_v27 = vpop.eup %1694  ;;  %v1605_v60 = vpop.f32.mrf.mxu0 }
0x1119   : > { %993 = vrot.lane.b32.xlu0 %v1695_v27, %s1802_s25  ;;  %v1207_v61 = vadd.f32 %v1605_v60, %v1407_v55 }
0x111a   : > { %v1697_v23 = vpop.eup %1696  ;;  %v1201_v0 = vpop.f32.mrf.mxu0 }
0x111b   : > { %v988_v28 = vadd.f32 1.0, %v1697_v23  ;;  %v1202_v1 = vadd.f32 %v1407_v55, %v1201_v0 }
0x111d   : > { %v989_v29 = vmul.f32 0.5, %v988_v28 }
0x111f   : > { %v991_v32 = vmul.f32 %v989_v29, %v903_v7 }
0x118b   : > { %v994_v30 = vpop.permute.xlu0 %993 }
0x118c   : > { %v996_v31 = vmul.f32 %v994_v30, %v989_v29 }
0x118e   : > { %998 = vrot.lane.b32.xlu1 %v996_v31, %s1802_s25 }
0x1200   : > { %v999_v33 = vpop.permute.xlu1 %998 }
0x1201   : > { %v1001_v34 = vadd.f32 %v999_v33, %v991_v32 }
0x1203   : > { %1698 = vtanh.f32 %v1001_v34 }
0x1210   : > { %v1699_v19 = vpop.eup %1698 }
0x1211   : > { %1004 = vrot.lane.b32.xlu0 %v1699_v19, %s1802_s25 }
0x1283   : > { %v1005_v35 = vpop.permute.xlu0 %1004 }
0x1284   : > { %v1007_v36 = vmul.f32 %v1005_v35, %v989_v29 }
0x1286   : > { %1009 = vrot.lane.b32.xlu1 %v1007_v36, %s1803_s26 }
0x12f8   : > { %v1010_v38 = vpop.permute.xlu1 %1009 }
0x12f9   : > { %1587 = vmatmul.mubr.msk.f32.vlgmr.msra.gmra.mxu1 %vm323_vm2, %v1010_v38  ;;  %1606 = vmatprep.mubr.msk.f32.mxu0 %vm323_vm2, %v1010_v38 }
0x13b9   : > { %v1079_v40 = vpop.f32.mrf.mxu1 }
0x13ba   : > { %v1083_v41 = vadd.f32 %v1079_v40, %v320_v39 }
0x13bb   : > { %v1588_v42 = vpop.f32.mrf.mxu1 }
0x13bc   : > { %1700 = vtanh.f32 %v1083_v41  ;;  %v1084_v44 = vmul.f32 0.5, %v1083_v41 }
0x13be   : > { %1702 = vtanh.f32 %v1084_v44 }
0x13c9   : > { %v1701_v43 = vpop.eup %1700 }
0x13ca   : > { %1091 = vrot.lane.b32.xlu0 %v1701_v43, %s1802_s25 }
0x13cb   : > { %v1703_v45 = vpop.eup %1702 }
0x13cc   : > { %v1086_v46 = vadd.f32 1.0, %v1703_v45 }
0x13ce   : > { %v1087_v47 = vmul.f32 0.5, %v1086_v46 }
0x13d0   : > { %v1089_v50 = vmul.f32 %v1087_v47, %v1001_v34 }
0x143c   : > { %v1092_v48 = vpop.permute.xlu0 %1091 }
0x143d   : > { %v1094_v49 = vmul.f32 %v1092_v48, %v1087_v47 }
0x143f   : > { %1096 = vrot.lane.b32.xlu1 %v1094_v49, %s1802_s25 }
0x14b1   : > { %v1097_v51 = vpop.permute.xlu1 %1096 }
0x14b2   : > { %v1099_v52 = vadd.f32 %v1097_v51, %v1089_v50 }
0x14b4   : > { %1704 = vtanh.f32 %v1099_v52 }
0x14c1   : > { %v1705_v17 = vpop.eup %1704 }
0x14c2   : > { %1102 = vrot.lane.b32.xlu0 %v1705_v17, %s1802_s25 }
0x14e1   : > { %1220 = vmax.xlane.f32.xlu0 %v1182_v56 }
0x14e5   : > { %1224 = vmax.xlane.f32.xlu0 %v1192_v58 }
0x14e9   : > { %1226 = vmax.xlane.f32.xlu0 %v1197_v59 }
0x14ed   : > { %1230 = vmax.xlane.f32.xlu0 %v1207_v61 }
0x1534   : > { %v1103_v62 = vpop.permute.xlu0 %1102 }
0x1535   : > { %v1105_v3 = vmul.f32 %v1103_v62, %v1087_v47 }
0x1537   : > { %1111 = vrot.lane.b32.xlu1 %v1105_v3, %s1803_s26  ;;  %s2152_s26 = scalar_lea.hbm %s2203_s3, %s1422_s19 }
0x155b   : > { %1222 = vmax.xlane.f32.xlu1 %v1187_v63 }
0x155f   : > { %1228 = vmax.xlane.f32.xlu1 %v1202_v1 }
0x156a   : > { %v1221_v4 = vpop.xlane.xlu0 %1220 }
0x156b   : > { %v2110_v12 = vsub.f32 %v1182_v56, %v1221_v4 }
0x156d   : > { %v1244_v10 = vmul.f32 1.442695, %v2110_v12 }
0x156e   : > { %v1225_v5 = vpop.xlane.xlu0 %1224 }
0x156f   : > { %v2116_v14 = vsub.f32 %v1192_v58, %v1225_v5 }
0x1571   : > { %v1248_v22 = vmul.f32 1.442695, %v2116_v14 }
0x1572   : > { %v1227_v6 = vpop.xlane.xlu0 %1226 }
0x1573   : > { %v2112_v7 = vsub.f32 %v1197_v59, %v1227_v6 }
0x1575   : > { %v1250_v20 = vmul.f32 1.442695, %v2112_v7 }
0x1576   : > { %v1231_v8 = vpop.xlane.xlu0 %1230 }
0x1577   : > { %v2119_v21 = vsub.f32 %v1207_v61, %v1231_v8 }
0x1579   : > { %v1254_v24 = vmul.f32 1.442695, %v2119_v21 }
0x15a9   : > { %v1112_v9 = vpop.permute.xlu1 %1111 }
0x15aa   : > { %1607 = vmatmul.mubr.msk.f32.gmra.mxu0 %vm323_vm2, %v1112_v9 }
0x15e4   : > { %v1223_v11 = vpop.xlane.xlu1 %1222 }
0x15e5   : > { %v2108_v2 = vsub.f32 %v1187_v63, %v1223_v11 }
0x15e7   : > { %v1246_v13 = vmul.f32 1.442695, %v2108_v2 }
0x15e8   : > { %v1229_v16 = vpop.xlane.xlu1 %1228 }
0x15e9   : > { %1706 = vpow2.f32 %v1246_v13  ;;  %v2122_v37 = vsub.f32 %v1202_v1, %v1229_v16 }
0x15ea   : > { %1708 = vpow2.f32 %v1244_v10 }
0x15eb   : > { %1710 = vpow2.f32 %v1250_v20  ;;  %v1252_v25 = vmul.f32 1.442695, %v2122_v37 }
0x15ec   : > { %1712 = vpow2.f32 %v1248_v22 }
0x15ed   : > { %1714 = vpow2.f32 %v1254_v24 }
0x15ee   : > { %1716 = vpow2.f32 %v1252_v25 }
0x15f6   : > { %v1707_v28 = vpop.eup %1706 }
0x15f7   : > { %v1709_v29 = vpop.eup %1708 }
0x15f8   : > { %v1711_v30 = vpop.eup %1710 }
0x15f9   : > { %v1713_v31 = vpop.eup %1712 }
0x15fa   : > { %v1715_v32 = vpop.eup %1714 }
0x15fb   : > { %v1717_v33 = vpop.eup %1716 }
0x166a   : > { %v1608_v26 = vpop.f32.mrf.mxu0 }
0x166b   : > { %v1217_v27 = vadd.f32 %v1608_v26, %v1407_v55 }
0x166c   : > { %v1211_v57 = vpop.f32.mrf.mxu0 }
0x166d   : > { %v1212_v23 = vadd.f32 %v1407_v55, %v1211_v57  ;;  %1234 = vmax.xlane.f32.xlu0 %v1217_v27 }
0x166f   : > { %1232 = vmax.xlane.f32.xlu1 %v1212_v23 }
0x1671   : > { %1262 = vadd.xlane.f32.xlu0 %v1707_v28 }
0x1673   : > { %1260 = vadd.xlane.f32.xlu1 %v1709_v29 }
0x1675   : > { %1266 = vadd.xlane.f32.xlu0 %v1711_v30 }
0x1677   : > { %1264 = vadd.xlane.f32.xlu1 %v1713_v31 }
0x1679   : > { %1270 = vadd.xlane.f32.xlu0 %v1715_v32 }
0x167b   : > { %1268 = vadd.xlane.f32.xlu1 %v1717_v33 }
0x16f6   : > { %v1235_v34 = vpop.xlane.xlu0 %1234 }
0x16f7   : > { %v2126_v19 = vsub.f32 %v1217_v27, %v1235_v34 }
0x16f8   : > { %v1233_v35 = vpop.xlane.xlu1 %1232 }
0x16f9   : > { %v1258_v36 = vmul.f32 1.442695, %v2126_v19  ;;  %v1242_v38 = vsub.f32 %v1212_v23, %v1233_v35 }
0x16fa   : > { %v1263_v39 = vpop.xlane.xlu0 %1262 }
0x16fb   : > { %1718 = vpow2.f32 %v1258_v36  ;;  %v1256_v40 = vmul.f32 1.442695, %v1242_v38 }
0x16fc   : > { %1720 = vlog2.f32 %v1263_v39  ;;  %v1261_v41 = vpop.xlane.xlu1 %1260 }
0x16fd   : > { %1722 = vpow2.f32 %v1256_v40 }
0x16fe   : > { %1724 = vlog2.f32 %v1261_v41  ;;  %v1267_v42 = vpop.xlane.xlu0 %1266 }
0x16ff   : > { %1726 = vlog2.f32 %v1267_v42 }
0x1700   : > { %v1265_v43 = vpop.xlane.xlu1 %1264 }
0x1701   : > { %1728 = vlog2.f32 %v1265_v43 }
0x1702   : > { %v1271_v44 = vpop.xlane.xlu0 %1270 }
0x1703   : > { %1730 = vlog2.f32 %v1271_v44 }
0x1704   : > { %v1269_v45 = vpop.xlane.xlu1 %1268 }
0x1705   : > { %1732 = vlog2.f32 %v1269_v45 }
0x1708   : > { %v1719_v46 = vpop.eup %1718 }
0x1709   : > { %v1721_v47 = vpop.eup %1720  ;;  %1274 = vadd.xlane.f32.xlu0 %v1719_v46 }
0x170a   : > { %v1723_v48 = vpop.eup %1722  ;;  %v1279_v49 = vmul.f32 0.6931472, %v1721_v47 }
0x170b   : > { %v1725_v50 = vpop.eup %1724  ;;  %1272 = vadd.xlane.f32.xlu1 %v1723_v48 }
0x170c   : > { %v1727_v51 = vpop.eup %1726  ;;  %v1293_v52 = vsub.f32 %v2108_v2, %v1279_v49  ;;  %v1277_v17 = vmul.f32 0.6931472, %v1725_v50 }
0x170d   : > { %v1283_v18 = vmul.f32 0.6931472, %v1727_v51 }
0x170e   : > { %v1729_v53 = vpop.eup %1728  ;;  %1301 = vst [vmem:[%s2133_s17 + $0x8] sm:$0xff] %v1293_v52  ;;  %v1292_v54 = vsub.f32 %v2110_v12, %v1277_v17 }
0x170f   : > { %v1295_v55 = vsub.f32 %v2112_v7, %v1283_v18  ;;  %v1281_v56 = vmul.f32 0.6931472, %v1729_v53 }
0x1710   : > { %v1731_v15 = vpop.eup %1730  ;;  %1300 = vst [vmem:[%s2133_s17] sm:$0xff] %v1292_v54 }
0x1711   : > { %1303 = vst [vmem:[%s2133_s17 + $0x18] sm:$0xff] %v1295_v55  ;;  %v1294_v58 = vsub.f32 %v2116_v14, %v1281_v56  ;;  %v1287_v59 = vmul.f32 0.6931472, %v1731_v15 }
0x1712   : > { %v1733_v60 = vpop.eup %1732 }
0x1713   : > { %1302 = vst [vmem:[%s2133_s17 + $0x10] sm:$0xff] %v1294_v58  ;;  %v1297_v61 = vsub.f32 %v2119_v21, %v1287_v59  ;;  %v1285_v62 = vmul.f32 0.6931472, %v1733_v60 }
0x1715   : > { %1305 = vst [vmem:[%s2133_s17 + $0x28] sm:$0xff] %v1297_v61  ;;  %v1296_v3 = vsub.f32 %v2122_v37, %v1285_v62 }
0x1717   : > { %1304 = vst [vmem:[%s2133_s17 + $0x20] sm:$0xff] %v1296_v3 }
0x1792   : > { %v1275_v63 = vpop.xlane.xlu0 %1274 }
0x1793   : > { %1734 = vlog2.f32 %v1275_v63 }
0x1794   : > { %v1273_v0 = vpop.xlane.xlu1 %1272 }
0x1795   : > { %1736 = vlog2.f32 %v1273_v0 }
0x17a0   : > { %v1735_v1 = vpop.eup %1734 }
0x17a1   : > { %v1291_v9 = vmul.f32 0.6931472, %v1735_v1 }
0x17a2   : > { %v1737_v4 = vpop.eup %1736 }
0x17a3   : > { %v1299_v5 = vsub.f32 %v2126_v19, %v1291_v9  ;;  %v1289_v11 = vmul.f32 0.6931472, %v1737_v4 }
0x17a5   : > { %1307 = vst [vmem:[%s2133_s17 + $0x38] sm:$0xff] %v1299_v5  ;;  %v1298_v6 = vsub.f32 %v1242_v38, %v1289_v11 }
0x17a7   : > { %1306 = vst [vmem:[%s2133_s17 + $0x30] sm:$0xff] %v1298_v6 }
0x17a8   : > { %1751 = shalt.err (!%p1748_p3)
}
0x17a9   : > { %s1752_s4 = scalar_lea.hbm %s2152_s26, 1024  ;;  %s1756_s7 = scalar_lea.hbm %s2203_s3, 2048 }
0x17aa   : > { %p1753_p4 = scmp.ne.s32.totalorder %s2152_s26, %s1752_s4  ;;  %p1757_p9 = scmp.lt.s32.totalorder %s2152_s26, %s2203_s3 }
0x17ab   : > { %p1758_p10 = scmp.lt.s32.totalorder %s1756_s7, %s1752_s4 }
0x17ac   : > { %p1754_p7 = pnand %p1753_p4, %p1865_p5 }
0x17ad   : > { %p1759_p11 = por %p1758_p10, %p1757_p9 }
0x17ae   : > { %p1755_p8 = pneg %p1754_p7 }
0x17b0   : > { %p1760_p12 = pnand %p1759_p11, %p1755_p8 }
0x17b2   : > { %1763 = shalt.err (!%p1760_p12)
}
0x17b3   : > { %s1805_s10 = smov 128   ;;  %s1806_s11 = smov 8  }
0x17b4   : > { %1613 = dma.vmem_to_hbm [thread:$0]  (%p1865_p5), %s2154_s20, 1024, %s2152_s26, %s2160_s16, %s1805_s10, %s1805_s10, %s1806_s11  }
0x17b5 PF: > { %p1619_p13 = scmp.ge.s32.totalorder %s1798_s15, 2  ;;  %s1337_s17 = sand.u32 1, %s1786_s12  }
0x17b6   : > { %s1338_s19 = scalar_lea.sflag [#allocation3], %s1337_s17 }
0x17b7   : > { %p1616_p0 = pnand %p1619_p13, %p1869_p6 }
0x17b9   : > { %p1617_p1 = pneg %p1616_p0 }
0x17bb   : > { %1781 = dma.done.wait (%p1617_p1), %s1338_s19, 1024  }
0x17bc   : > { %1783 = vsyncadd (%p1617_p1), %s1338_s19, 4294966272  ;;  %p13_p2 = scmp.ge.s32.totalorder %s1852_s18, 4   ;;  %s2206_s12 = smov %s1790_s13 }
0x17bd   : > { %s2207_s13 = smov %s1794_s14  ;;  %s2208_s14 = smov %s1863_s21 }
0x17be   : > { %s2209_s15 = smov %s1852_s18  ;;  %15 = sbr.rel (!%p13_p2) target bundleno = 3 (0x3), region = 67 }
0x17c3   :  { %1343 = vsyncpa [#allocation3], 1 }
0x17c4   :  { %1345 = vsyncpa [#allocation3 + $0x1], 1 }

</bundles_post_ra>
